<compile_context>
chip_gen: v7x
topology: tpu7x:2x2x1
jax: 0.10.0
libtpu: 0.0.40
codegen_flags: <defaults>
</compile_context>

<pallas_src>
import jax
import jax.numpy as jnp
from jax.experimental import pallas as pl
from jax.experimental.pallas import tpu as pltpu


def _shortcut_a_kernel(sel_ref, x_ref, o_ref):
    # sel_ref : (HW, HoWo)     0/1 selection matrix, resident across grid steps
    # x_ref   : (bt, C, HW)    lane-dense flattened input batch tile
    # o_ref   : (bt, Cout, HoWo) lane-dense flattened output batch tile
    bt, c, hw = x_ref.shape
    _, cout, howo = o_ref.shape
    pad = (cout - c) // 2

    # Combined H+W stride-2 subsample as a single selection matmul on the MXU.
    # Merging (bt, c) touches major/sublane dims only (free when bt == 1 or c % 8 == 0).
    v = x_ref[...].reshape(bt * c, hw)
    sub = jnp.dot(v, sel_ref[...],
                  precision=jax.lax.Precision.HIGHEST,
                  preferred_element_type=jnp.float32)
    sub = sub.reshape(bt, c, howo).astype(o_ref.dtype)

    # Channel zero-pad: three disjoint channel-band stores, all lane-dense.
    if pad > 0:
        o_ref[:, 0:pad, :] = jnp.zeros((bt, pad, howo), o_ref.dtype)
        o_ref[:, pad + c:cout, :] = jnp.zeros((bt, cout - pad - c, howo), o_ref.dtype)
    o_ref[:, pad:pad + c, :] = sub


def _tile_bytes(shape, itemsize):
    """VMEM footprint of one block under the (8,128) tiled layout.  Sublane tile grows
    with dtype packing: 8 rows for 4-byte, 16 for 2-byte, 32 for 1-byte dtypes."""
    sub_tile = 8 * max(1, 4 // itemsize)
    if len(shape) == 1:
        return pl.cdiv(shape[0], 128) * 128 * itemsize
    *major, sub, lane = shape
    n = 1
    for d in major:
        n *= d
    return n * pl.cdiv(sub, sub_tile) * sub_tile * pl.cdiv(lane, 128) * 128 * itemsize


def _pick_batch_tile(b, block_cost_fn, budget_bytes, min_steps=4):
    """Largest batch-tile (divisor of b) whose double-buffered in+out blocks fit the
    budget, preferring >= min_steps grid steps (2 per TensorCore on v7x), then >= 2."""
    divs = [d for d in range(1, b + 1) if b % d == 0]
    fitting = [d for d in divs if block_cost_fn(d) <= budget_bytes]
    if not fitting:
        return 1
    for steps in (min_steps, 2):
        ok = [d for d in fitting if b // d >= steps]
        if ok:
            return max(ok)
    return max(fitting)


def lambda_shortcut_a(x, planes):
    """Pallas TPU version of
       lambda x: F.pad(x[:, :, ::2, ::2], (0,0,0,0, planes//4, planes//4), 'constant', 0)
    NCHW in, NCHW out (PyTorch layout); no wrapper-side transposes."""
    b, c, h, w = x.shape
    pad = planes // 4
    cout = c + 2 * pad
    ho, wo = (h + 1) // 2, (w + 1) // 2
    hw, howo = h * w, ho * wo
    itemsize = x.dtype.itemsize

    # Free metadata reshape (contiguous NCHW): lane dim becomes H*W / Ho*Wo.
    xf = x.reshape(b, c, hw)

    # 0/1 selection matrix picking flat input index 2*i*W + 2*j for output (i, j).
    ii = jnp.arange(ho, dtype=jnp.int32)
    jj = jnp.arange(wo, dtype=jnp.int32)
    src = (2 * ii[:, None] * w + 2 * jj[None, :]).reshape(howo)
    sel = (jnp.arange(hw, dtype=jnp.int32)[:, None] == src[None, :]).astype(x.dtype)

    # Honest VMEM accounting: tiled-layout padding + double buffering of in+out blocks.
    try:
        vmem_cap = int(pltpu.get_tpu_info().vmem_capacity_bytes)
    except Exception:
        vmem_cap = 64 * 1024 * 1024  # conservative: v7x per-TC physical VMEM

    def block_cost(bt):
        return 2 * (_tile_bytes((bt, c, hw), itemsize)
                    + _tile_bytes((bt, cout, howo), itemsize))

    bt = _pick_batch_tile(b, block_cost, budget_bytes=vmem_cap // 4, min_steps=4)

    sel_bytes = _tile_bytes((hw, howo), itemsize)
    vmem_limit = block_cost(bt) + 2 * sel_bytes + (8 << 20)       # + compiler headroom
    vmem_limit = int(min(max(vmem_limit, 32 << 20), int(vmem_cap * 0.9)))

    out_flat = pl.pallas_call(
        _shortcut_a_kernel,
        out_shape=jax.ShapeDtypeStruct((b, cout, howo), x.dtype),
        grid=(b // bt,),
        in_specs=[
            pl.BlockSpec((hw, howo), lambda i: (0, 0)),           # sel: resident
            pl.BlockSpec((bt, c, hw), lambda i: (i, 0, 0)),
        ],
        out_specs=pl.BlockSpec((bt, cout, howo), lambda i: (i, 0, 0)),
        compiler_params=pltpu.CompilerParams(
            dimension_semantics=("parallel",),
            vmem_limit_bytes=vmem_limit,
        ),
    )(sel, xf)

    return out_flat.reshape(b, cout, ho, wo)


if __name__ == "__main__":
    key = jax.random.PRNGKey(0)
    B, C, H, W = 2, 4, 16, 16
    planes = 8                     # option-'A' shortcut doubles channels: 4 -> 8
    x = jax.random.normal(key, (B, C, H, W), dtype=jnp.float32)

    out = jax.jit(lambda_shortcut_a, static_argnums=1)(x, planes)
    out = jax.block_until_ready(out)

    # pure-JAX reference of the lambda's semantics
    pad = planes // 4
    ref = jnp.pad(x[:, :, ::2, ::2], ((0, 0), (pad, pad), (0, 0), (0, 0)))
    assert out.shape == (B, C + 2 * pad, (H + 1) // 2, (W + 1) // 2), out.shape
    assert jnp.allclose(out, ref), "mismatch vs pure-JAX reference"

    print("KERNEL_OK")
</pallas_src>

<mosaic_0001>
module attributes {stable_mosaic.version = 11 : i64} {
  func.func @_shortcut_a_kernel(%arg0: i32, %arg1: memref<256x64xf32, #tpu.memory_space<vmem>>, %arg2: memref<1x4x256xf32, #tpu.memory_space<vmem>>, %arg3: memref<1x8x64xf32, #tpu.memory_space<vmem>>) attributes {dimension_semantics = [#tpu.dimension_semantics<parallel>], iteration_bounds = array<i64: 2>, scalar_prefetch = 0 : i64, scratch_operands = 0 : i64, tpu.core_type = #tpu.core_type<tc>, window_params = [{pipeline_mode = #tpu.pipeline_mode<synchronous>, transform_indices = @transform_0, window_bounds = array<i64: 256, 64>}, {transform_indices = @transform_1, window_bounds = array<i64: 1, 4, 256>}, {transform_indices = @transform_2, window_bounds = array<i64: 1, 8, 64>}]} {
    %c0 = arith.constant 0 : index
    %c0_0 = arith.constant 0 : index
    %c0_1 = arith.constant 0 : index
    %0 = vector.load %arg2[%c0, %c0_0, %c0_1] : memref<1x4x256xf32, #tpu.memory_space<vmem>>, vector<1x4x256xf32>
    %1 = vector.shape_cast %0 : vector<1x4x256xf32> to vector<4x256xf32>
    %c0_2 = arith.constant 0 : index
    %c0_3 = arith.constant 0 : index
    %2 = vector.load %arg1[%c0_2, %c0_3] : memref<256x64xf32, #tpu.memory_space<vmem>>, vector<256x64xf32>
    %cst = arith.constant dense<0.000000e+00> : vector<4x64xf32>
    %3 = tpu.matmul %1, %2, %cst {dimension_numbers = #tpu.dot_dimension_numbers<[1], [0], [0], [1], [0, 0, 1, 1], [], []>, precision = #tpu.contract_precision<fp32>} : vector<4x256xf32>, vector<256x64xf32>, vector<4x64xf32> -> vector<4x64xf32>
    %4 = vector.shape_cast %3 : vector<4x64xf32> to vector<1x4x64xf32>
    %cst_4 = arith.constant 0.000000e+00 : f32
    %5 = vector.broadcast %cst_4 : f32 to vector<1x2x64xf32>
    %c0_5 = arith.constant 0 : index
    %c0_6 = arith.constant 0 : index
    %c0_7 = arith.constant 0 : index
    %6 = vector.load %arg3[%c0_5, %c0_6, %c0_7] : memref<1x8x64xf32, #tpu.memory_space<vmem>>, vector<1x2x64xf32>
    tpu.vector_store %arg3[%c0_5, %c0_6, %c0_7], %5 {strides = array<i32>} : memref<1x8x64xf32, #tpu.memory_space<vmem>>, vector<1x2x64xf32>,
    %cst_8 = arith.constant 0.000000e+00 : f32
    %7 = vector.broadcast %cst_8 : f32 to vector<1x2x64xf32>
    %c0_9 = arith.constant 0 : index
    %c6 = arith.constant 6 : index
    %c0_10 = arith.constant 0 : index
    %8 = vector.load %arg3[%c0_9, %c6, %c0_10] : memref<1x8x64xf32, #tpu.memory_space<vmem>>, vector<1x2x64xf32>
    tpu.vector_store %arg3[%c0_9, %c6, %c0_10], %7 {strides = array<i32>} : memref<1x8x64xf32, #tpu.memory_space<vmem>>, vector<1x2x64xf32>,
    %c0_11 = arith.constant 0 : index
    %c2 = arith.constant 2 : index
    %c0_12 = arith.constant 0 : index
    %9 = vector.load %arg3[%c0_11, %c2, %c0_12] : memref<1x8x64xf32, #tpu.memory_space<vmem>>, vector<1x4x64xf32>
    tpu.vector_store %arg3[%c0_11, %c2, %c0_12], %4 {strides = array<i32>} : memref<1x8x64xf32, #tpu.memory_space<vmem>>, vector<1x4x64xf32>,
    return
  }
  func.func @transform_0(%arg0: i32) -> (i32, i32) {
    %c0_i32 = arith.constant 0 : i32
    %c0_i32_0 = arith.constant 0 : i32
    %c0_i32_1 = arith.constant 0 : i32
    return %c0_i32, %c0_i32_0 : i32, i32
  }
  func.func @transform_1(%arg0: i32) -> (i32, i32, i32) {
    %c0_i32 = arith.constant 0 : i32
    %c0_i32_0 = arith.constant 0 : i32
    %c0_i32_1 = arith.constant 0 : i32
    return %arg0, %c0_i32, %c0_i32_0 : i32, i32, i32
  }
  func.func @transform_2(%arg0: i32) -> (i32, i32, i32) {
    %c0_i32 = arith.constant 0 : i32
    %c0_i32_0 = arith.constant 0 : i32
    %c0_i32_1 = arith.constant 0 : i32
    return %arg0, %c0_i32, %c0_i32_0 : i32, i32, i32
  }
}

</mosaic_0001>

<bundles_post_ra>
// kernel: lambda_shortcut_a.1
= control target key start
LH: loop header
LB: loop body
LE: loop exit
PB: predicated region body
PF: predicated region fallthrough
CT: control target
= control target key end

     0   :  { %s1545_s9 = smov 0   ;;  %s2075_s0 = inlined_call_operand.vmem [shape: f32[256,64], index: 0, kind: input, shape index: {}]   ;;  %s2076_s1 = inlined_call_operand.vmem [shape: f32[2,4,256], index: 1, kind: input, shape index: {}]   ;;  %s2077_s2 = inlined_call_operand.vmem [shape: f32[2,8,64], index: 2, kind: output, shape index: {}]  }
   0x1 LB: > { %s1098_s10 = sadd.s32 4294967295, %s1527_s9   ;;  %p1102_p0 = scmp.ge.s32.totalorder %s1527_s9, 1  ;;  %s1527_s9 = sphi %s1545_s9, %s12_s9  }
   0x2   : > { %p112_p1 = scmp.lt.s32.totalorder %s1527_s9, 3 }
   0x4   : > { %p113_p2 = pnand %p1102_p0, %p112_p1 }
   0x6   : > { %116 = sbr.rel (%p113_p2) target bundleno = 355 (0x163), region = 28 }
   0xd   : > { %v159_v0 = vld [vmem:[%s2075_s0 + $0x80] sm:$0xff]  ;;  %v160_v1 = vld [vmem:[%s2075_s0 + $0x88] sm:$0xff]  ;;  %v161_v7 = vld [vmem:[%s2075_s0 + $0x90] sm:$0xff]  ;;  %p1745_p3 = scmp.lt.s32.totalorder %s1098_s10, 1  ;;  %vm1040_vm0 = vcmask 517120   ;;  %vm1043_vm1 = vcmask 519168  }
   0xe   : > { %v143_v2 = vld [vmem:[%s2075_s0] sm:$0xff]  ;;  %v227_v3 = vand.u32 4294901760, %v159_v0  ;;  %v230_v4 = vand.u32 4294901760, %v160_v1  ;;  %v144_v5 = vld [vmem:[%s2075_s0 + $0x8] sm:$0xff]  ;;  %v162_v8 = vld [vmem:[%s2075_s0 + $0x98] sm:$0xff]  ;;  %v233_v10 = vand.u32 4294901760, %v161_v7 }
   0xf   : > { %v179_v6 = vand.u32 4294901760, %v143_v2  ;;  %v182_v9 = vand.u32 4294901760, %v144_v5  ;;  %v236_v11 = vand.u32 4294901760, %v162_v8  ;;  %v145_v12 = vld [vmem:[%s2075_s0 + $0x10] sm:$0xff]  ;;  %v146_v13 = vld [vmem:[%s2075_s0 + $0x18] sm:$0xff]  ;;  %v163_v18 = vld [vmem:[%s2075_s0 + $0xa0] sm:$0xff] }
  0x10   : > { %v1577_v14 = vpack.c.bf16 %v230_v4, %v227_v3  ;;  %v185_v16 = vand.u32 4294901760, %v145_v12  ;;  %v188_v17 = vand.u32 4294901760, %v146_v13  ;;  %v164_v19 = vld [vmem:[%s2075_s0 + $0xa8] sm:$0xff]  ;;  %v147_v23 = vld [vmem:[%s2075_s0 + $0x20] sm:$0xff]  ;;  %v1600_v25 = vsub.f32 %v161_v7, %v233_v10  ;;  %v165_v37 = vld [vmem:[%s2075_s0 + $0xb0] sm:$0xff]  ;;  %s2166_s10 = smov (!%p1745_p3, %s1098_s10), 1 }
  0x11   : > { %v1579_v15 = vsub.f32 %v143_v2, %v179_v6  ;;  %v1587_v20 = vpack.c.bf16 %v182_v9, %v179_v6  ;;  %v1589_v21 = vsub.f32 %v144_v5, %v182_v9  ;;  %v1591_v22 = vpack.c.bf16 %v236_v11, %v233_v10  ;;  %v148_v24 = vld [vmem:[%s2075_s0 + $0x28] sm:$0xff]  ;;  %v166_v42 = vld [vmem:[%s2075_s0 + $0xb8] sm:$0xff]  ;;  %v149_v55 = vld [vmem:[%s2075_s0 + $0x30] sm:$0xff]  ;;  %s1108_s20 = sshll.u32 %s2166_s10, 3 }
  0x12   : > { %1320 = vmatprep.subr.bf16.mxu0 %v1577_v14  ;;  %v1602_v26 = vsub.f32 %v162_v8, %v236_v11  ;;  %v1604_v27 = vpack.c.bf16 %v188_v17, %v185_v16  ;;  %v1606_v28 = vsub.f32 %v145_v12, %v185_v16  ;;  %v239_v29 = vand.u32 4294901760, %v163_v18  ;;  %v150_v56 = vld [vmem:[%s2075_s0 + $0x38] sm:$0xff]  ;;  %v167_v5 = vld [vmem:[%s2075_s0 + $0xc0] sm:$0xff]  ;;  %v168_v6 = vld [vmem:[%s2075_s0 + $0xc8] sm:$0xff]  ;;  %s137_s27 = scalar_lea.vmem %s2076_s1, %s1108_s20  ;;  %s141_s30 = scalar_lea.vmem %s2077_s2, %s1108_s20 }
  0x13   : > { %1322 = vmatpush3.bf16.msra.mxu0 %v1587_v20  ;;  %v242_v30 = vand.u32 4294901760, %v164_v19  ;;  %v1609_v31 = vsub.f32 %v159_v0, %v227_v3  ;;  %v1611_v32 = vsub.f32 %v160_v1, %v230_v4  ;;  %v191_v33 = vand.u32 4294901760, %v147_v23  ;;  %v151_v11 = vld [vmem:[%s2075_s0 + $0x40] sm:$0xff] }
  0x14   : > { %1324 = vmatprep.subr.bf16.mxu0 %v1591_v22  ;;  %v194_v34 = vand.u32 4294901760, %v148_v24  ;;  %v2095_v35 = vand.u32 4294901760, %v1579_v15  ;;  %v2094_v36 = vand.u32 4294901760, %v1589_v21  ;;  %v1619_v38 = vsub.f32 %v146_v13, %v188_v17 }
  0x15   : > { %v1621_v39 = vpack.c.bf16 %v242_v30, %v239_v29  ;;  %v1623_v40 = vsub.f32 %v163_v18, %v239_v29  ;;  %v2097_v41 = vand.u32 4294901760, %v1609_v31  ;;  %v1629_v43 = vsub.f32 %v164_v19, %v242_v30  ;;  %v152_v29 = vld [vmem:[%s2075_s0 + $0x48] sm:$0xff] }
  0x16   : > { %v2096_v44 = vand.u32 4294901760, %v1611_v32  ;;  %v1632_v45 = vpack.c.bf16 %v194_v34, %v191_v33  ;;  %v1634_v46 = vsub.f32 %v147_v23, %v191_v33  ;;  %v294_v48 = vsub.f32 %v1579_v15, %v2095_v35 }
  0x17   : > { %1326 = vmatpush3.bf16.msra.mxu0 %v1604_v27  ;;  %v406_v47 = vsub.f32 %v1609_v31, %v2097_v41  ;;  %v301_v49 = vsub.f32 %v1589_v21, %v2094_v36  ;;  %v245_v50 = vand.u32 4294901760, %v165_v37  ;;  %v248_v52 = vand.u32 4294901760, %v166_v42  ;;  %v142_v41 = vld [vmem:[%s137_s27] sm:$0xff] }
  0x18   : > { %1328 = vmatprep.subr.bf16.mxu0 %v1621_v39  ;;  %v413_v51 = vsub.f32 %v1611_v32, %v2096_v44  ;;  %v2093_v53 = vand.u32 4294901760, %v1600_v25  ;;  %v2090_v54 = vand.u32 4294901760, %v1602_v26  ;;  %v1658_v58 = vsub.f32 %v148_v24, %v194_v34 }
  0x19   : > { %v407_v57 = vand.u32 4294901760, %v406_v47  ;;  %v295_v59 = vand.u32 4294901760, %v294_v48  ;;  %v302_v60 = vand.u32 4294901760, %v301_v49  ;;  %v1660_v62 = vpack.c.bf16 %v248_v52, %v245_v50 }
  0x1a   : > { %v414_v61 = vand.u32 4294901760, %v413_v51  ;;  %v1662_v63 = vsub.f32 %v165_v37, %v245_v50  ;;  %v420_v0 = vsub.f32 %v1600_v25, %v2093_v53  ;;  %v427_v2 = vsub.f32 %v1602_v26, %v2090_v54 }
  0x1b   : > { %1330 = vmatpush3.bf16.msra.mxu0 %v1632_v45  ;;  %v1353_v1 = vpack.c.bf16 %v302_v60, %v295_v59  ;;  %v197_v3 = vand.u32 4294901760, %v149_v55  ;;  %v200_v4 = vand.u32 4294901760, %v150_v56  ;;  %v2089_v9 = vand.u32 4294901760, %v1606_v28 }
  0x1c   : > { %v1351_v7 = vpack.c.bf16 %v414_v61, %v407_v57  ;;  %1332 = vmatprep.subr.bf16.mxu0 %v1660_v62  ;;  %v421_v8 = vand.u32 4294901760, %v420_v0  ;;  %v2086_v10 = vand.u32 4294901760, %v1619_v38  ;;  %v1683_v12 = vsub.f32 %v166_v42, %v248_v52  ;;  %v170_v57 = vld [vmem:[%s2075_s0 + $0xd8] sm:$0xff] }
  0x1d   : > { %v428_v13 = vand.u32 4294901760, %v427_v2  ;;  %v1685_v16 = vpack.c.bf16 %v200_v4, %v197_v3  ;;  %v1687_v17 = vsub.f32 %v149_v55, %v197_v3  ;;  %v308_v18 = vsub.f32 %v1606_v28, %v2089_v9 }
  0x1e   : > { %1352 = vmatprep.subr.bf16.mxu1 %v1351_v7  ;;  %v315_v19 = vsub.f32 %v1619_v38, %v2086_v10  ;;  %v251_v23 = vand.u32 4294901760, %v167_v5  ;;  %v254_v24 = vand.u32 4294901760, %v168_v6  ;;  %v2085_v33 = vand.u32 4294901760, %v1623_v40 }
  0x1f   : > { %1354 = vmatpush3.bf16.msra.mxu1 %v1353_v1  ;;  %v1355_v30 = vpack.c.bf16 %v428_v13, %v421_v8  ;;  %1334 = vmatpush3.bf16.msra.mxu0 %v1685_v16  ;;  %v2083_v34 = vand.u32 4294901760, %v1629_v43  ;;  %v203_v37 = vand.u32 4294901760, %v151_v11  ;;  %v1701_v42 = vsub.f32 %v150_v56, %v200_v4  ;;  %v169_v56 = vld [vmem:[%s2075_s0 + $0xd0] sm:$0xff] }
  0x20   : > { %v309_v47 = vand.u32 4294901760, %v308_v18  ;;  %v316_v48 = vand.u32 4294901760, %v315_v19  ;;  %v1703_v49 = vpack.c.bf16 %v254_v24, %v251_v23  ;;  %v1705_v50 = vsub.f32 %v167_v5, %v251_v23  ;;  %v153_v1 = vld [vmem:[%s2075_s0 + $0x50] sm:$0xff]  ;;  %v154_v18 = vld [vmem:[%s2075_s0 + $0x58] sm:$0xff] }
  0x21   : > { %1356 = vmatprep.subr.bf16.mxu1 %v1355_v30  ;;  %v434_v51 = vsub.f32 %v1623_v40, %v2085_v33  ;;  %v441_v52 = vsub.f32 %v1629_v43, %v2083_v34  ;;  %v206_v55 = vand.u32 4294901760, %v152_v29  ;;  %v1720_v60 = vsub.f32 %v168_v6, %v254_v24 }
  0x22   : > { %v1357_v59 = vpack.c.bf16 %v316_v48, %v309_v47  ;;  %1336 = vmatprep.subr.bf16.mxu0 %v1703_v49  ;;  %v2082_v61 = vand.u32 4294901760, %v1634_v46  ;;  %v2080_v0 = vand.u32 4294901760, %v1658_v58  ;;  %v1729_v5 = vsub.f32 %v151_v11, %v203_v37 }
  0x23   : > { %v435_v2 = vand.u32 4294901760, %v434_v51  ;;  %v442_v3 = vand.u32 4294901760, %v441_v52  ;;  %v1727_v4 = vpack.c.bf16 %v206_v55, %v203_v37  ;;  %v257_v8 = vand.u32 4294901760, %v169_v56 }
  0x24   : > { %1358 = vmatpush3.bf16.msra.mxu1 %v1357_v59  ;;  %v322_v6 = vsub.f32 %v1634_v46, %v2082_v61  ;;  %v329_v7 = vsub.f32 %v1658_v58, %v2080_v0  ;;  %v260_v13 = vand.u32 4294901760, %v170_v57  ;;  %v2079_v11 = vand.u32 4294901760, %v1662_v63 }
  0x25   : > { %v1359_v19 = vpack.c.bf16 %v442_v3, %v435_v2  ;;  %1338 = vmatpush3.bf16.msra.mxu0 %v1727_v4  ;;  %v2078_v23 = vand.u32 4294901760, %v1683_v12  ;;  %v209_v24 = vand.u32 4294901760, %v153_v1  ;;  %v1749_v30 = vsub.f32 %v152_v29, %v206_v55  ;;  %v171_v29 = vld [vmem:[%s2075_s0 + $0xe0] sm:$0xff]  ;;  %v172_v55 = vld [vmem:[%s2075_s0 + $0xe8] sm:$0xff] }
  0x26   : > { %v323_v37 = vand.u32 4294901760, %v322_v6  ;;  %v330_v47 = vand.u32 4294901760, %v329_v7  ;;  %v1751_v48 = vpack.c.bf16 %v260_v13, %v257_v8  ;;  %v1753_v51 = vsub.f32 %v169_v56, %v257_v8  ;;  %v155_v8 = vld [vmem:[%s2075_s0 + $0x60] sm:$0xff] }
  0x27   : > { %1360 = vmatprep.subr.bf16.mxu1 %v1359_v19  ;;  %v448_v52 = vsub.f32 %v1662_v63, %v2079_v11  ;;  %v455_v59 = vsub.f32 %v1683_v12, %v2078_v23  ;;  %v212_v2 = vand.u32 4294901760, %v154_v18  ;;  %v1768_v3 = vsub.f32 %v170_v57, %v260_v13 }
  0x28   : > { %v1361_v56 = vpack.c.bf16 %v330_v47, %v323_v37  ;;  %1340 = vmatprep.subr.bf16.mxu0 %v1751_v48  ;;  %v2081_v6 = vand.u32 4294901760, %v1687_v17  ;;  %v2084_v7 = vand.u32 4294901760, %v1701_v42  ;;  %v1777_v0 = vsub.f32 %v153_v1, %v209_v24  ;;  %v156_v1 = vld [vmem:[%s2075_s0 + $0x68] sm:$0xff] }
  0x29   : > { %v449_v19 = vand.u32 4294901760, %v448_v52  ;;  %v456_v23 = vand.u32 4294901760, %v455_v59  ;;  %v1775_v11 = vpack.c.bf16 %v212_v2, %v209_v24  ;;  %v263_v37 = vand.u32 4294901760, %v171_v29 }
  0x2a   : > { %1362 = vmatpush3.bf16.msra.mxu1 %v1361_v56  ;;  %v336_v57 = vsub.f32 %v1687_v17, %v2081_v6  ;;  %v343_v13 = vsub.f32 %v1701_v42, %v2084_v7  ;;  %v266_v47 = vand.u32 4294901760, %v172_v55  ;;  %v2088_v52 = vand.u32 4294901760, %v1705_v50 }
  0x2b   : > { %v1363_v24 = vpack.c.bf16 %v456_v23, %v449_v19  ;;  %1342 = vmatpush3.bf16.msra.mxu0 %v1775_v11  ;;  %v2087_v59 = vand.u32 4294901760, %v1720_v60  ;;  %v215_v56 = vand.u32 4294901760, %v155_v8  ;;  %v1797_v6 = vsub.f32 %v154_v18, %v212_v2  ;;  %v173_v18 = vld [vmem:[%s2075_s0 + $0xf0] sm:$0xff]  ;;  %v174_v2 = vld [vmem:[%s2075_s0 + $0xf8] sm:$0xff] }
  0x2c   : > { %v337_v61 = vand.u32 4294901760, %v336_v57  ;;  %v344_v34 = vand.u32 4294901760, %v343_v13  ;;  %v1799_v7 = vpack.c.bf16 %v266_v47, %v263_v37  ;;  %v1801_v33 = vsub.f32 %v171_v29, %v263_v37 }
  0x2d   : > { %1364 = vmatprep.subr.bf16.mxu1 %v1363_v24  ;;  %v462_v23 = vsub.f32 %v1705_v50, %v2088_v52  ;;  %v469_v19 = vsub.f32 %v1720_v60, %v2087_v59  ;;  %v218_v10 = vand.u32 4294901760, %v156_v1  ;;  %v1817_v57 = vsub.f32 %v172_v55, %v266_v47  ;;  %v157_v24 = vld [vmem:[%s2075_s0 + $0x70] sm:$0xff] }
  0x2e   : > { %2122 = vst [vmem:[#allocation2_spill] sm:$0xff] %v1799_v7  ;;  %v1365_v29 = vpack.c.bf16 %v344_v34, %v337_v61  ;;  %1344 = vmatprep.subr.bf16.mxu0 %v1799_v7  ;;  %v2092_v13 = vand.u32 4294901760, %v1729_v5  ;;  %v2091_v37 = vand.u32 4294901760, %v1749_v30  ;;  %v1826_v54 = vsub.f32 %v155_v8, %v215_v56 }
  0x2f   : > { %v463_v59 = vand.u32 4294901760, %v462_v23  ;;  %v470_v52 = vand.u32 4294901760, %v469_v19  ;;  %v1824_v9 = vpack.c.bf16 %v218_v10, %v215_v56  ;;  %v269_v55 = vand.u32 4294901760, %v173_v18  ;;  %v158_v23 = vld [vmem:[%s2075_s0 + $0x78] sm:$0xff] }
  0x30   : > { %1366 = vmatpush3.bf16.msra.mxu1 %v1365_v29  ;;  %v350_v34 = vsub.f32 %v1729_v5, %v2092_v13  ;;  %v357_v61 = vsub.f32 %v1749_v30, %v2091_v37  ;;  %v272_v47 = vand.u32 4294901760, %v174_v2  ;;  %v2102_v56 = vand.u32 4294901760, %v1753_v51 }
  0x31   : > { %2123 = vst [vmem:[#allocation3_spill] sm:$0xff] %v1824_v9  ;;  %v1367_v8 = vpack.c.bf16 %v470_v52, %v463_v59  ;;  %1346 = vmatpush3.bf16.msra.mxu0 %v1824_v9  ;;  %v2100_v19 = vand.u32 4294901760, %v1768_v3  ;;  %v221_v29 = vand.u32 4294901760, %v157_v24  ;;  %v1845_v37 = vsub.f32 %v156_v1, %v218_v10 }
  0x32   : > { %v351_v13 = vand.u32 4294901760, %v350_v34  ;;  %v358_v53 = vand.u32 4294901760, %v357_v61  ;;  %v1847_v36 = vpack.c.bf16 %v272_v47, %v269_v55  ;;  %v1849_v35 = vsub.f32 %v173_v18, %v269_v55 }
  0x33   : > { %1368 = vmatprep.subr.bf16.mxu1 %v1367_v8  ;;  %v476_v52 = vsub.f32 %v1753_v51, %v2102_v56  ;;  %v483_v59 = vsub.f32 %v1768_v3, %v2100_v19  ;;  %v224_v44 = vand.u32 4294901760, %v158_v23  ;;  %v1858_v10 = vsub.f32 %v174_v2, %v272_v47 }
  0x34   : > { %2124 = vst [vmem:[#allocation4_spill] sm:$0xff] %v1847_v36  ;;  %v1369_v9 = vpack.c.bf16 %v358_v53, %v351_v13  ;;  %1348 = vmatprep.subr.bf16.mxu0 %v1847_v36  ;;  %v2101_v1 = vand.u32 4294901760, %v1777_v0  ;;  %v2103_v18 = vand.u32 4294901760, %v1797_v6  ;;  %v1864_v8 = vsub.f32 %v157_v24, %v221_v29 }
  0x35   : > { %v477_v34 = vand.u32 4294901760, %v476_v52  ;;  %v484_v61 = vand.u32 4294901760, %v483_v59  ;;  %v1862_v55 = vpack.c.bf16 %v224_v44, %v221_v29  ;;  %v176_v2 = vcombine.high %v142_v41, %v142_v41 }
  0x36   : > { %1370 = vmatpush3.bf16.msra.mxu1 %v1369_v9  ;;  %v364_v19 = vsub.f32 %v1777_v0, %v2101_v1  ;;  %v371_v53 = vsub.f32 %v1797_v6, %v2103_v18  ;;  %v1872_v13 = vand.u32 4294901760, %v142_v41  ;;  %v2106_v52 = vand.u32 4294901760, %v1801_v33 }
  0x37   : > { %2125 = vst [vmem:[#allocation5_spill] sm:$0xff] %v1862_v55  ;;  %v1371_v47 = vpack.c.bf16 %v484_v61, %v477_v34  ;;  %1350 = vmatpush3.bf16.msra.mxu0 %v1862_v55  ;;  %v2109_v24 = vand.u32 4294901760, %v1817_v57  ;;  %v1383_v9 = vpack.c.bf16 %v1611_v32, %v1609_v31  ;;  %v1879_v1 = vand.u32 4294901760, %v176_v2 }
  0x38   : > { %v365_v29 = vand.u32 4294901760, %v364_v19  ;;  %v372_v59 = vand.u32 4294901760, %v371_v53  ;;  %v1882_v56 = vsub.f32 %v142_v41, %v1872_v13  ;;  %v490_v34 = vsub.f32 %v1801_v33, %v2106_v52 }
  0x39   : > { %2126 = vst [vmem:[#allocation6_spill] sm:$0xff] %v1879_v1  ;;  %1372 = vmatprep.subr.bf16.mxu1 %v1371_v47  ;;  %v497_v61 = vsub.f32 %v1817_v57, %v2109_v24  ;;  %1384 = vmatprep.subr.bf16.mxu0 %v1383_v9  ;;  %v2110_v18 = vand.u32 4294901760, %v1826_v54  ;;  %v2111_v19 = vand.u32 4294901760, %v1845_v37  ;;  %v1892_v53 = vsub.f32 %v158_v23, %v224_v44 }
  0x3a   : > { %2127 = vst [vmem:[#allocation7_spill] sm:$0xff] %v1882_v56  ;;  %v1373_v55 = vpack.c.bf16 %v372_v59, %v365_v29  ;;  %v1895_v41 = vsub.f32 %v176_v2, %v1879_v1  ;;  %v2114_v47 = vand.u32 4294901760, %v1882_v56  ;;  %515 = vmatprep.mubr.f32.mxu1 %v1879_v1  ;;  %v491_v52 = vand.u32 4294901760, %v490_v34 }
  0x3b   : > { %v498_v36 = vand.u32 4294901760, %v497_v61  ;;  %v378_v9 = vsub.f32 %v1826_v54, %v2110_v18  ;;  %v385_v24 = vsub.f32 %v1845_v37, %v2111_v19  ;;  %v2119_v2 = vand.u32 4294901760, %v1849_v35 }
  0x3c   : > { %1374 = vmatpush3.bf16.msra.mxu1 %v1373_v55  ;;  %v276_v44 = vand.u32 4294901760, %v1895_v41  ;;  %v283_v23 = vsub.f32 %v1882_v56, %v2114_v47  ;;  %v510_v29 = vand.u32 4294901760, %v1858_v10  ;;  %v2120_v56 = vand.u32 4294901760, %v1864_v8 }
  0x3d   : > { %v1375_v59 = vpack.c.bf16 %v498_v36, %v491_v52  ;;  %v379_v34 = vand.u32 4294901760, %v378_v9  ;;  %v386_v61 = vand.u32 4294901760, %v385_v24  ;;  %v504_v19 = vsub.f32 %v1849_v35, %v2119_v2 }
  0x3e   : > { %v277_v18 = vsub.f32 %v1895_v41, %v276_v44  ;;  %v511_v55 = vsub.f32 %v1858_v10, %v510_v29  ;;  %v284_v1 = vand.u32 4294901760, %v283_v23  ;;  %v398_v7 = vand.u32 4294901760, %v1892_v53 }
  0x3f   : > { %1376 = vmatprep.subr.bf16.mxu1 %v1375_v59  ;;  %v1377_v47 = vpack.c.bf16 %v386_v61, %v379_v34  ;;  %v1385_v52 = vpack.c.bf16 %v1589_v21, %v1579_v15  ;;  %v505_v24 = vand.u32 4294901760, %v504_v19  ;;  %v1387_v2 = vpack.c.bf16 %v1602_v26, %v1600_v25 }
  0x40   : > { %v278_v36 = vand.u32 4294901760, %v277_v18  ;;  %v512_v9 = vand.u32 4294901760, %v511_v55  ;;  %v392_v59 = vsub.f32 %v1864_v8, %v2120_v56  ;;  %v399_v23 = vsub.f32 %v1892_v53, %v398_v7 }
  0x41   : > { %1378 = vmatpush3.bf16.msra.mxu1 %v1377_v47  ;;  %v1389_v19 = vpack.c.bf16 %v1619_v38, %v1606_v28  ;;  %v1391_v47 = vpack.c.bf16 %v1629_v43, %v1623_v40  ;;  %v1393_v56 = vpack.c.bf16 %v1658_v58, %v1634_v46 }
  0x42   : > { %279 = vmatprep.mubr.f32.mxu0 %v278_v36  ;;  %v1379_v34 = vpack.c.bf16 %v512_v9, %v505_v24  ;;  %v393_v18 = vand.u32 4294901760, %v392_v59  ;;  %v400_v61 = vand.u32 4294901760, %v399_v23  ;;  %v2128_v36 = vand.u32 4294901760, %v1609_v31 }
  0x43   : > { %285 = vmatmul.mubr.f32.vlgmr.msra.gmra.mrb[0].mxu0 %v284_v1  ;;  %v2129_v1 = vand.u32 4294901760, %v1611_v32  ;;  %v2131_v9 = vand.u32 4294901760, %v1589_v21  ;;  %v2132_v23 = vand.u32 4294901760, %v1600_v25  ;;  %v2136_v31 = vand.u32 4294901760, %v1623_v40 }
  0x44   : > { %1386 = vmatpush3.bf16.msra.mxu0 %v1385_v52  ;;  %1380 = vmatprep.subr.bf16.mxu1 %v1379_v34  ;;  %v1381_v55 = vpack.c.bf16 %v400_v61, %v393_v18  ;;  %v2130_v52 = vand.u32 4294901760, %v1579_v15  ;;  %v2134_v18 = vand.u32 4294901760, %v1606_v28  ;;  %v2135_v61 = vand.u32 4294901760, %v1619_v38 }
  0x45   : > { %1388 = vmatprep.subr.bf16.mxu0 %v1387_v2  ;;  %652 = vmatprep.mubr.f32.mxu0 %v1895_v41  ;;  %v1447_v24 = vpack.c.bf16 %v2129_v1, %v2128_v36  ;;  %v2133_v2 = vand.u32 4294901760, %v1602_v26  ;;  %v2137_v32 = vand.u32 4294901760, %v1629_v43  ;;  %v2138_v15 = vand.u32 4294901760, %v1634_v46 }
  0x46   : > { %v1449_v59 = vpack.c.bf16 %v2131_v9, %v2130_v52  ;;  %v1453_v41 = vpack.c.bf16 %v2135_v61, %v2134_v18  ;;  %1382 = vmatpush3.bf16.msra.mxu1 %v1381_v55  ;;  %v2139_v21 = vand.u32 4294901760, %v1658_v58  ;;  %v2140_v25 = vand.u32 4294901760, %v1662_v63 }
  0x47   : > { %v1451_v34 = vpack.c.bf16 %v2133_v2, %v2132_v23  ;;  %v1455_v36 = vpack.c.bf16 %v2137_v32, %v2136_v31  ;;  %v2141_v26 = vand.u32 4294901760, %v1683_v12  ;;  %v2142_v28 = vand.u32 4294901760, %v1687_v17  ;;  %1416 = vmatprep.subr.bf16.mxu1 %v1577_v14 }
  0x48   : > { %v1457_v1 = vpack.c.bf16 %v2139_v21, %v2138_v15  ;;  %v2143_v38 = vand.u32 4294901760, %v1701_v42  ;;  %v2144_v40 = vand.u32 4294901760, %v1705_v50  ;;  %v2145_v43 = vand.u32 4294901760, %v1720_v60  ;;  %1390 = vmatpush3.bf16.msra.mxu0 %v1389_v19 }
  0x49   : > { %v1459_v52 = vpack.c.bf16 %v2141_v26, %v2140_v25  ;;  %v2146_v46 = vand.u32 4294901760, %v1729_v5  ;;  %v2147_v58 = vand.u32 4294901760, %v1749_v30  ;;  %v2148_v2 = vand.u32 4294901760, %v1753_v51  ;;  %1392 = vmatprep.subr.bf16.mxu0 %v1391_v47  ;;  %517 = vmatmul.mubr.f32.vlgmr.msra.gmra.mrb[0].mxu1 %v1872_v13 }
  0x4a   : > { %v1461_v9 = vpack.c.bf16 %v2143_v38, %v2142_v28  ;;  %v1463_v55 = vpack.c.bf16 %v2145_v43, %v2144_v40  ;;  %v2149_v18 = vand.u32 4294901760, %v1768_v3  ;;  %v2150_v31 = vand.u32 4294901760, %v1777_v0  ;;  %1418 = vmatpush3.bf16.msra.mxu1 %v1587_v20  ;;  %759 = vmatprep.mubr.f32.mxu1 %v276_v44 }
  0x4b   : > { %v1465_v23 = vpack.c.bf16 %v2147_v58, %v2146_v46  ;;  %v2151_v32 = vand.u32 4294901760, %v1797_v6  ;;  %v1395_v19 = vpack.c.bf16 %v1683_v12, %v1662_v63  ;;  %v2152_v21 = vand.u32 4294901760, %v1826_v54  ;;  %1420 = vmatprep.subr.bf16.mxu1 %v1591_v22 }
  0x4c   : > { %v1467_v61 = vpack.c.bf16 %v2149_v18, %v2148_v2  ;;  %v2153_v25 = vand.u32 4294901760, %v1845_v37  ;;  %1394 = vmatpush3.bf16.msra.mxu0 %v1393_v56  ;;  %v1397_v47 = vpack.c.bf16 %v1701_v42, %v1687_v17  ;;  %v1399_v63 = vpack.c.bf16 %v1720_v60, %v1705_v50 }
  0x4d   : > { %v1986_v15 = vpack.c.bf16 %v2151_v32, %v2150_v31  ;;  %1396 = vmatprep.subr.bf16.mxu0 %v1395_v19  ;;  %v1401_v12 = vpack.c.bf16 %v1749_v30, %v1729_v5  ;;  %v1403_v56 = vpack.c.bf16 %v1768_v3, %v1753_v51  ;;  %v1405_v17 = vpack.c.bf16 %v1797_v6, %v1777_v0  ;;  %v2154_v5 = vld [vmem:[#allocation2_spill] sm:$0xff]  ;;  %v2156_v30 = vld [vmem:[#allocation3_spill] sm:$0xff]  ;;  %v2157_v51 = vld [vmem:[#allocation4_spill] sm:$0xff] }
  0x4e   : > { %v1994_v26 = vpack.c.bf16 %v2153_v25, %v2152_v21  ;;  %1422 = vmatpush3.bf16.msra.mxu1 %v1604_v27  ;;  %v1407_v42 = vpack.c.bf16 %v1817_v57, %v1801_v33  ;;  %v1409_v50 = vpack.c.bf16 %v1845_v37, %v1826_v54  ;;  %v1411_v60 = vpack.c.bf16 %v1858_v10, %v1849_v35  ;;  %v2155_v54 = vld [vmem:[#allocation7_spill] sm:$0xff]  ;;  %v2158_v3 = vld [vmem:[#allocation6_spill] sm:$0xff]  ;;  %v2159_v6 = vld [vmem:[#allocation5_spill] sm:$0xff] }
  0x4f   : > { %1424 = vmatprep.subr.bf16.mxu1 %v1621_v39  ;;  %v1413_v0 = vpack.c.bf16 %v1892_v53, %v1864_v8  ;;  %v2160_v37 = vand.u32 4294901760, %v2155_v54 }
  0x50   : > { %1398 = vmatpush3.bf16.msra.mxu0 %v1397_v47 }
  0x51   : > { %1400 = vmatprep.subr.bf16.mxu0 %v1399_v63 }
  0x52   : > { %1426 = vmatpush3.bf16.msra.mxu1 %v1632_v45 }
  0x53   : > { %1428 = vmatprep.subr.bf16.mxu1 %v1660_v62 }
  0x54   : > { %1402 = vmatpush3.bf16.msra.mxu0 %v1401_v12 }
  0x55   : > { %1404 = vmatprep.subr.bf16.mxu0 %v1403_v56 }
  0x56   : > { %1430 = vmatpush3.bf16.msra.mxu1 %v1685_v16 }
  0x57   : > { %1432 = vmatprep.subr.bf16.mxu1 %v1703_v49 }
  0x58   : > { %1406 = vmatpush3.bf16.msra.mxu0 %v1405_v17 }
  0x59   : > { %1408 = vmatprep.subr.bf16.mxu0 %v1407_v42 }
  0x5a   : > { %1434 = vmatpush3.bf16.msra.mxu1 %v1727_v4 }
  0x5b   : > { %1436 = vmatprep.subr.bf16.mxu1 %v1751_v48 }
  0x5c   : > { %1410 = vmatpush3.bf16.msra.mxu0 %v1409_v50 }
  0x5d   : > { %1412 = vmatprep.subr.bf16.mxu0 %v1411_v60 }
  0x5e   : > { %1438 = vmatpush3.bf16.msra.mxu1 %v1775_v11 }
  0x5f   : > { %1440 = vmatprep.subr.bf16.mxu1 %v2154_v5 }
  0x60   : > { %1414 = vmatpush3.bf16.msra.mxu0 %v1413_v0 }
  0x61   : > { %1448 = vmatprep.subr.bf16.mxu0 %v1447_v24 }
  0x62   : > { %1442 = vmatpush3.bf16.msra.mxu1 %v2156_v30 }
  0x63   : > { %655 = vmatmul.mubr.f32.vlgmr.msra.gmra.mrb[2].mxu0 %v2155_v54  ;;  %1444 = vmatprep.subr.bf16.mxu1 %v2157_v51 }
  0x64   : > { %1450 = vmatpush3.bf16.msra.mxu0 %v1449_v59  ;;  %929 = vmatprep.mubr.f32.mxu0 %v2158_v3 }
  0x65   : > { %1452 = vmatprep.subr.bf16.mxu0 %v1451_v34 }
  0x66   : > { %1446 = vmatpush3.bf16.msra.mxu1 %v2159_v6 }
  0x67   : > { %1480 = vmatprep.subr.bf16.mxu1 %v1577_v14  ;;  %v2161_v14 = vand.u32 4294901760, %v1801_v33 }
  0x68   : > { %1454 = vmatpush3.bf16.msra.mxu0 %v1453_v41 }
  0x69   : > { %1456 = vmatprep.subr.bf16.mxu0 %v1455_v36  ;;  %763 = vmatmul.mubr.f32.vlgmr.msra.gmra.mrb[2].mxu1 %v2160_v37 }
  0x6a   : > { %1482 = vmatpush3.bf16.msra.mxu1 %v1587_v20  ;;  %1033 = vmatprep.mubr.f32.mxu1 %v2158_v3  ;;  %v2162_v20 = vand.u32 4294901760, %v1817_v57 }
  0x6b   : > { %1484 = vmatprep.subr.bf16.mxu1 %v1591_v22  ;;  %v2163_v22 = vand.u32 4294901760, %v1849_v35  ;;  %v1529_v35 = vmov 0.0  }
  0x6c   : > { %1458 = vmatpush3.bf16.msra.mxu0 %v1457_v1  ;;  %v1471_v44 = vpack.c.bf16 %v2162_v20, %v2161_v14  ;;  %1041 = vst.msk [vmem:[%s141_s30] sm:$0x3] %vm1040_vm0, %v1529_v35  ;;  %1042 = vst.msk [vmem:[%s141_s30 + $0x6] sm:$0x3] %vm1040_vm0, %v1529_v35 }
  0x6d   : > { %1460 = vmatprep.subr.bf16.mxu0 %v1459_v52 }
  0x6e   : > { %1486 = vmatpush3.bf16.msra.mxu1 %v1604_v27  ;;  %v1475_v27 = vpack.c.bf16 %v510_v29, %v2163_v22 }
  0x6f   : > { %1488 = vmatprep.subr.bf16.mxu1 %v1621_v39  ;;  %v2164_v39 = vand.u32 4294901760, %v1864_v8 }
  0x70   : > { %1462 = vmatpush3.bf16.msra.mxu0 %v1461_v9 }
  0x71   : > { %1464 = vmatprep.subr.bf16.mxu0 %v1463_v55 }
  0x72   : > { %1490 = vmatpush3.bf16.msra.mxu1 %v1632_v45  ;;  %v1477_v45 = vpack.c.bf16 %v398_v7, %v2164_v39 }
  0x73   : > { %1492 = vmatprep.subr.bf16.mxu1 %v1660_v62 }
  0x74   : > { %1466 = vmatpush3.bf16.msra.mxu0 %v1465_v23 }
  0x75   : > { %1468 = vmatprep.subr.bf16.mxu0 %v1467_v61 }
  0x76   : > { %1494 = vmatpush3.bf16.msra.mxu1 %v1685_v16 }
  0x77   : > { %1496 = vmatprep.subr.bf16.mxu1 %v1703_v49 }
  0x78   : > { %1470 = vmatpush3.bf16.msra.mxu0 %v1986_v15 }
  0x79   : > { %1472 = vmatprep.subr.bf16.mxu0 %v1471_v44 }
  0x7a   : > { %1498 = vmatpush3.bf16.msra.mxu1 %v1727_v4 }
  0x7b   : > { %1500 = vmatprep.subr.bf16.mxu1 %v1751_v48 }
  0x7c   : > { %1474 = vmatpush3.bf16.msra.mxu0 %v1994_v26 }
  0x7d   : > { %1476 = vmatprep.subr.bf16.mxu0 %v1475_v27 }
  0x7e   : > { %1502 = vmatpush3.bf16.msra.mxu1 %v1775_v11 }
  0x7f   : > { %1504 = vmatprep.subr.bf16.mxu1 %v2154_v5 }
  0x80   : > { %1478 = vmatpush3.bf16.msra.mxu0 %v1477_v45 }
  0x82   : > { %1506 = vmatpush3.bf16.msra.mxu1 %v2156_v30 }
  0x83   : > { %931 = vmatmul.mubr.f32.vlgmr.msra.gmra.mrb[4].mxu0 %v1872_v13  ;;  %1508 = vmatprep.subr.bf16.mxu1 %v2157_v51 }
  0x86   : > { %1510 = vmatpush3.bf16.msra.mxu1 %v2159_v6 }
  0x89   : > { %1035 = vmatmul.mubr.f32.vlgmr.msra.gmra.mrb[4].mxu1 %v1872_v13 }
 0x116   : > { %v1141_v62 = vpop.f32.mrb[0].mxu0 }
 0x117   : > { %v1142_v16 = vpop.f32.mrb[1].mxu0 }
 0x118   : > { %v1143_v33 = vadd.f32 %v1142_v16, %v1141_v62 }
 0x11c   : > { %v1176_v49 = vpop.f32.mrb[0].mxu1 }
 0x11d   : > { %v1177_v4 = vpop.f32.mrb[1].mxu1 }
 0x11e   : > { %v1178_v11 = vadd.f32 %v1177_v4, %v1176_v49 }
 0x120   : > { %v519_v48 = vadd.f32 %v1178_v11, %v1143_v33 }
 0x136   : > { %v1211_v7 = vpop.f32.mrb[2].mxu0 }
 0x137   : > { %v1212_v57 = vpop.f32.mrb[3].mxu0 }
 0x138   : > { %v1213_v10 = vadd.f32 %v1212_v57, %v1211_v7 }
 0x13a   : > { %v657_v8 = vadd.f32 %v1213_v10, %v519_v48 }
 0x13c   : > { %v1246_v13 = vpop.f32.mrb[2].mxu1 }
 0x13d   : > { %v1247_v53 = vpop.f32.mrb[3].mxu1 }
 0x13e   : > { %v1248_v29 = vadd.f32 %v1247_v53, %v1246_v13 }
 0x140   : > { %v765_v24 = vadd.f32 %v1248_v29, %v657_v8 }
 0x156   : > { %v1281_v59 = vpop.f32.mrb[4].mxu0 }
 0x157   : > { %v1282_v34 = vpop.f32.mrb[5].mxu0 }
 0x158   : > { %v1283_v41 = vadd.f32 %v1282_v34, %v1281_v59 }
 0x15a   : > { %v933_v36 = vadd.f32 %v1283_v41, %v765_v24 }
 0x15c   : > { %v1316_v1 = vpop.f32.mrb[4].mxu1 }
 0x15d   : > { %v1317_v52 = vpop.f32.mrb[5].mxu1 }
 0x15e   : > { %v1318_v28 = vadd.f32 %v1317_v52, %v1316_v1 }
 0x160   : > { %v1037_v38 = vadd.f32 %v1318_v28, %v933_v36 }
 0x162   : > { %1044 = vst.msk [vmem:[%s141_s30 + $0x2] sm:$0xf] %vm1043_vm1, %v1037_v38 }
 0x163 PF: > { %s12_s9 = sadd.s32 1, %s1527_s9  }
 0x164   : > { %p9_p4 = scmp.ge.s32.totalorder %s12_s9, 4  }
 0x166   :  { %11 = sbr.rel (!%p9_p4) target bundleno = 1 (0x1), region = 58 }

</bundles_post_ra>
